<compile_context>
chip_gen: v5e
topology: v5e:2x2
jax: 0.10.0
libtpu: 0.0.40
codegen_flags: <defaults>
</compile_context>

<pallas_src>
import jax
import jax.numpy as jnp
from jax.experimental import pallas as pl
from jax.experimental.pallas import tpu as pltpu


def bb84nn_kernel(x_ref, w1_ref, b1_ref, w2_ref, b2_ref, w3_ref, b3_ref, o_ref):
    x = x_ref[...]            # (4, TN)   batch on lanes
    b1 = b1_ref[...]          # (32, 1)   hoisted once per tile
    b2 = b2_ref[...]          # (16, 1)
    b3 = b3_ref[...]          # (5, 1)

    # fc1 + ReLU   (dropout p=0.3 is identity in eval mode)
    h1 = jnp.dot(w1_ref[...], x, preferred_element_type=jnp.float32) + b1   # (32, TN)
    h1 = jnp.maximum(h1, 0.0)

    # fc2 + ReLU   (dropout p=0.3 is identity in eval mode)
    h2 = jnp.dot(w2_ref[...], h1, preferred_element_type=jnp.float32) + b2  # (16, TN)
    h2 = jnp.maximum(h2, 0.0)

    # fc3
    h3 = jnp.dot(w3_ref[...], h2, preferred_element_type=jnp.float32) + b3  # (5, TN)
    o_ref[...] = h3.astype(o_ref.dtype)


def _round_up(n, m):
    return ((n + m - 1) // m) * m


def bb84nn_forward(x, params, max_tile_n=1024):
    """x: (N, 4) float32. params: w1 (32,4), b1 (32,1), w2 (16,32), b2 (16,1),
    w3 (5,16), b3 (5,1) — PyTorch (out, in) weight layout. Returns (N, 5)."""
    n = x.shape[0]
    w1, b1 = params["w1"], params["b1"]
    w2, b2 = params["w2"], params["b2"]
    w3, b3 = params["w3"], params["b3"]

    # Lane-dense tiling: tile the batch (lane) axis in multiples of 128.
    # Tiles sized for v7x's smaller VMEM are still trivially small here
    # (x tile 4*TN*4B + out tile 5*TN*4B << 1 MiB at TN=1024), so no
    # vmem_limit_bytes override is needed.
    tn = min(max_tile_n, _round_up(n, 128))
    n_pad = _round_up(n, tn)

    # Transpose to (4, N) and zero-pad the batch to a tile multiple
    # (padded columns produce garbage rows that are sliced off below).
    xt = jnp.zeros((4, n_pad), x.dtype).at[:, :n].set(x.T)

    grid = (n_pad // tn,)

    const = lambda arr: pl.BlockSpec(arr.shape, lambda i: (0, 0))

    out_t = pl.pallas_call(
        bb84nn_kernel,
        out_shape=jax.ShapeDtypeStruct((5, n_pad), jnp.float32),
        grid=grid,
        in_specs=[
            pl.BlockSpec((4, tn), lambda i: (0, i)),   # x tile, lane-dense
            const(w1), const(b1),
            const(w2), const(b2),
            const(w3), const(b3),
        ],
        out_specs=pl.BlockSpec((5, tn), lambda i: (0, i)),
        compiler_params=pltpu.CompilerParams(
            dimension_semantics=("parallel",),
        ),
    )(xt, w1, b1, w2, b2, w3, b3)

    return out_t[:, :n].T   # back to (N, 5)


def init_params(key):
    """Deterministic synthetic init matching nn.Linear shapes in PyTorch
    (out, in) convention: fc1 (32,4), fc2 (16,32), fc3 (5,16); biases (out, 1)."""
    keys = jax.random.split(key, 6)

    def linear(kw, kb, fan_in, fan_out):
        bound = 1.0 / jnp.sqrt(fan_in)
        w = jax.random.uniform(kw, (fan_out, fan_in), jnp.float32, -bound, bound)
        b = jax.random.uniform(kb, (fan_out, 1), jnp.float32, -bound, bound)
        return w, b

    w1, b1 = linear(keys[0], keys[1], 4, 32)
    w2, b2 = linear(keys[2], keys[3], 32, 16)
    w3, b3 = linear(keys[4], keys[5], 16, 5)
    return {"w1": w1, "b1": b1, "w2": w2, "b2": b2, "w3": w3, "b3": b3}


def reference_forward(x, params):
    """Plain-JAX reference in standard (N, F) layout."""
    h1 = jnp.maximum(x @ params["w1"].T + params["b1"][:, 0], 0.0)
    h2 = jnp.maximum(h1 @ params["w2"].T + params["b2"][:, 0], 0.0)
    return h2 @ params["w3"].T + params["b3"][:, 0]


if __name__ == "__main__":
    key = jax.random.PRNGKey(0)
    k_x, k_p = jax.random.split(key)

    batch = 8
    x = jax.random.normal(k_x, (batch, 4), jnp.float32)
    params = init_params(k_p)

    out = bb84nn_forward(x, params)
    out = jax.block_until_ready(out)

    ref = reference_forward(x, params)
    assert out.shape == (batch, 5), out.shape
    assert jnp.allclose(out, ref, atol=1e-5, rtol=1e-5), "mismatch vs. reference"

    print("KERNEL_OK")
</pallas_src>

<mosaic_0001>
module attributes {stable_mosaic.version = 11 : i64} {
  func.func @bb84nn_kernel(%arg0: i32, %arg1: memref<4x128xf32, #tpu.memory_space<vmem>>, %arg2: memref<32x4xf32, #tpu.memory_space<vmem>>, %arg3: memref<32x1xf32, #tpu.memory_space<vmem>>, %arg4: memref<16x32xf32, #tpu.memory_space<vmem>>, %arg5: memref<16x1xf32, #tpu.memory_space<vmem>>, %arg6: memref<5x16xf32, #tpu.memory_space<vmem>>, %arg7: memref<5x1xf32, #tpu.memory_space<vmem>>, %arg8: memref<5x128xf32, #tpu.memory_space<vmem>>) attributes {dimension_semantics = [#tpu.dimension_semantics<parallel>], iteration_bounds = array<i64: 1>, scalar_prefetch = 0 : i64, scratch_operands = 0 : i64, tpu.core_type = #tpu.core_type<tc>, window_params = [{transform_indices = @transform_0, window_bounds = array<i64: 4, 128>}, {pipeline_mode = #tpu.pipeline_mode<synchronous>, transform_indices = @transform_1, window_bounds = array<i64: 32, 4>}, {pipeline_mode = #tpu.pipeline_mode<synchronous>, transform_indices = @transform_2, window_bounds = array<i64: 32, 1>}, {pipeline_mode = #tpu.pipeline_mode<synchronous>, transform_indices = @transform_3, window_bounds = array<i64: 16, 32>}, {pipeline_mode = #tpu.pipeline_mode<synchronous>, transform_indices = @transform_4, window_bounds = array<i64: 16, 1>}, {pipeline_mode = #tpu.pipeline_mode<synchronous>, transform_indices = @transform_5, window_bounds = array<i64: 5, 16>}, {pipeline_mode = #tpu.pipeline_mode<synchronous>, transform_indices = @transform_6, window_bounds = array<i64: 5, 1>}, {transform_indices = @transform_7, window_bounds = array<i64: 5, 128>}]} {
    %c0 = arith.constant 0 : index
    %c0_0 = arith.constant 0 : index
    %0 = vector.load %arg1[%c0, %c0_0] : memref<4x128xf32, #tpu.memory_space<vmem>>, vector<4x128xf32>
    %c0_1 = arith.constant 0 : index
    %c0_2 = arith.constant 0 : index
    %1 = vector.load %arg3[%c0_1, %c0_2] : memref<32x1xf32, #tpu.memory_space<vmem>>, vector<32x1xf32>
    %c0_3 = arith.constant 0 : index
    %c0_4 = arith.constant 0 : index
    %2 = vector.load %arg5[%c0_3, %c0_4] : memref<16x1xf32, #tpu.memory_space<vmem>>, vector<16x1xf32>
    %c0_5 = arith.constant 0 : index
    %c0_6 = arith.constant 0 : index
    %3 = vector.load %arg7[%c0_5, %c0_6] : memref<5x1xf32, #tpu.memory_space<vmem>>, vector<5x1xf32>
    %c0_7 = arith.constant 0 : index
    %c0_8 = arith.constant 0 : index
    %4 = vector.load %arg2[%c0_7, %c0_8] : memref<32x4xf32, #tpu.memory_space<vmem>>, vector<32x4xf32>
    %cst = arith.constant dense<0.000000e+00> : vector<32x128xf32>
    %5 = tpu.matmul %4, %0, %cst {dimension_numbers = #tpu.dot_dimension_numbers<[1], [0], [0], [1], [0, 0, 1, 1], [], []>} : vector<32x4xf32>, vector<4x128xf32>, vector<32x128xf32> -> vector<32x128xf32>
    %6 = vector.broadcast %1 : vector<32x1xf32> to vector<32x128xf32>
    %7 = arith.addf %5, %6 : vector<32x128xf32>
    %cst_9 = arith.constant 0.000000e+00 : f32
    %8 = vector.broadcast %cst_9 : f32 to vector<32x128xf32>
    %9 = arith.maximumf %7, %8 : vector<32x128xf32>
    %c0_10 = arith.constant 0 : index
    %c0_11 = arith.constant 0 : index
    %10 = vector.load %arg4[%c0_10, %c0_11] : memref<16x32xf32, #tpu.memory_space<vmem>>, vector<16x32xf32>
    %cst_12 = arith.constant dense<0.000000e+00> : vector<16x128xf32>
    %11 = tpu.matmul %10, %9, %cst_12 {dimension_numbers = #tpu.dot_dimension_numbers<[1], [0], [0], [1], [0, 0, 1, 1], [], []>} : vector<16x32xf32>, vector<32x128xf32>, vector<16x128xf32> -> vector<16x128xf32>
    %12 = vector.broadcast %2 : vector<16x1xf32> to vector<16x128xf32>
    %13 = arith.addf %11, %12 : vector<16x128xf32>
    %cst_13 = arith.constant 0.000000e+00 : f32
    %14 = vector.broadcast %cst_13 : f32 to vector<16x128xf32>
    %15 = arith.maximumf %13, %14 : vector<16x128xf32>
    %c0_14 = arith.constant 0 : index
    %c0_15 = arith.constant 0 : index
    %16 = vector.load %arg6[%c0_14, %c0_15] : memref<5x16xf32, #tpu.memory_space<vmem>>, vector<5x16xf32>
    %cst_16 = arith.constant dense<0.000000e+00> : vector<5x128xf32>
    %17 = tpu.matmul %16, %15, %cst_16 {dimension_numbers = #tpu.dot_dimension_numbers<[1], [0], [0], [1], [0, 0, 1, 1], [], []>} : vector<5x16xf32>, vector<16x128xf32>, vector<5x128xf32> -> vector<5x128xf32>
    %18 = vector.broadcast %3 : vector<5x1xf32> to vector<5x128xf32>
    %19 = arith.addf %17, %18 : vector<5x128xf32>
    %c0_17 = arith.constant 0 : index
    %c0_18 = arith.constant 0 : index
    %20 = vector.load %arg8[%c0_17, %c0_18] : memref<5x128xf32, #tpu.memory_space<vmem>>, vector<5x128xf32>
    tpu.vector_store %arg8[%c0_17, %c0_18], %19 {strides = array<i32>} : memref<5x128xf32, #tpu.memory_space<vmem>>, vector<5x128xf32>,
    return
  }
  func.func @transform_0(%arg0: i32) -> (i32, i32) {
    %c0_i32 = arith.constant 0 : i32
    %c0_i32_0 = arith.constant 0 : i32
    return %c0_i32, %arg0 : i32, i32
  }
  func.func @transform_1(%arg0: i32) -> (i32, i32) {
    %c0_i32 = arith.constant 0 : i32
    %c0_i32_0 = arith.constant 0 : i32
    %c0_i32_1 = arith.constant 0 : i32
    return %c0_i32, %c0_i32_0 : i32, i32
  }
  func.func @transform_2(%arg0: i32) -> (i32, i32) {
    %c0_i32 = arith.constant 0 : i32
    %c0_i32_0 = arith.constant 0 : i32
    %c0_i32_1 = arith.constant 0 : i32
    return %c0_i32, %c0_i32_0 : i32, i32
  }
  func.func @transform_3(%arg0: i32) -> (i32, i32) {
    %c0_i32 = arith.constant 0 : i32
    %c0_i32_0 = arith.constant 0 : i32
    %c0_i32_1 = arith.constant 0 : i32
    return %c0_i32, %c0_i32_0 : i32, i32
  }
  func.func @transform_4(%arg0: i32) -> (i32, i32) {
    %c0_i32 = arith.constant 0 : i32
    %c0_i32_0 = arith.constant 0 : i32
    %c0_i32_1 = arith.constant 0 : i32
    return %c0_i32, %c0_i32_0 : i32, i32
  }
  func.func @transform_5(%arg0: i32) -> (i32, i32) {
    %c0_i32 = arith.constant 0 : i32
    %c0_i32_0 = arith.constant 0 : i32
    %c0_i32_1 = arith.constant 0 : i32
    return %c0_i32, %c0_i32_0 : i32, i32
  }
  func.func @transform_6(%arg0: i32) -> (i32, i32) {
    %c0_i32 = arith.constant 0 : i32
    %c0_i32_0 = arith.constant 0 : i32
    %c0_i32_1 = arith.constant 0 : i32
    return %c0_i32, %c0_i32_0 : i32, i32
  }
  func.func @transform_7(%arg0: i32) -> (i32, i32) {
    %c0_i32 = arith.constant 0 : i32
    %c0_i32_0 = arith.constant 0 : i32
    return %c0_i32, %arg0 : i32, i32
  }
}

</mosaic_0001>

<bundles_post_ra>
// kernel: tpu_custom_call.1
= control target key start
LH: loop header
LB: loop body
LE: loop exit
PB: predicated region body
PF: predicated region fallthrough
CT: control target
= control target key end

     0   :  { %vm72_vm0 = vcmask 1043456   ;;  %vm59_vm1 = vcmask 31744   ;;  %v240_v2 = vmov 0   ;;  %s334_s0 = inlined_call_operand.vmem [shape: f32[4,128], index: 0, kind: input, shape index: {}]   ;;  %s335_s1 = inlined_call_operand.vmem [shape: f32[32,4], index: 1, kind: input, shape index: {}]   ;;  %s336_s2 = inlined_call_operand.vmem [shape: f32[32,1], index: 2, kind: input, shape index: {}]   ;;  %s337_s3 = inlined_call_operand.vmem [shape: f32[16,32], index: 3, kind: input, shape index: {}]   ;;  %s338_s4 = inlined_call_operand.vmem [shape: f32[16,1], index: 4, kind: input, shape index: {}]   ;;  %s339_s5 = inlined_call_operand.vmem [shape: f32[5,16], index: 5, kind: input, shape index: {}]   ;;  %s340_s6 = inlined_call_operand.vmem [shape: f32[5,1], index: 6, kind: input, shape index: {}]   ;;  %s341_s7 = inlined_call_operand.hbm [shape: f32[5,128], index: 7, kind: output, shape index: {}]  }
   0x1   :  { %v27_v0 = vld [vmem:[%s334_s0] sm:$0xf]  ;;  %v37_v1 = vld [vmem:[%s335_s1 + $0x10] sm:$0xff]  ;;  %211 = vset.pattern.permute.xlu0 %v240_v2  ;;  %v31_v3 = vld [vmem:[%s336_s2 + $0x18] sm:$0xff]  ;;  %212 = vset.pattern.permute.xlu1 %v240_v2 }
   0x2   :  { %208 = vmatpush.msk.msra.mxu3 %vm72_vm0, %v27_v0  ;;  %v35_v4 = vld [vmem:[%s335_s1] sm:$0xff]  ;;  %56 = vperm.xlu0 %211, %v31_v3   ;;  %v29_v5 = vld [vmem:[%s336_s2 + $0x8] sm:$0xff] }
   0x3   :  { %203 = vmatmul.msk.f32.vlgmr.msra.gmra.mxu3 %vm59_vm1, %v37_v1  ;;  %200 = vmatpush.msk.msra.mxu0 %vm72_vm0, %v27_v0 }
   0x4   :  { %12 = vsyncpa [#allocation3], 0  ;;  %201 = vmatmul.msk.f32.vlgmr.msra.gmra.mxu0 %vm59_vm1, %v35_v4  ;;  %46 = vperm.xlu1 %212, %v29_v5   ;;  %v38_v6 = vld [vmem:[%s335_s1 + $0x18] sm:$0xff]  ;;  %v30_v7 = vld [vmem:[%s336_s2 + $0x10] sm:$0xff]  ;;  %vm121_vm2 = vcmask 261120   ;;  %vm159_vm3 = vcmask 130048  }
   0x5   :  { %213 = vset.pattern.permute.xlu2 %v240_v2  ;;  %v36_v8 = vld [vmem:[%s335_s1 + $0x8] sm:$0xff]  ;;  %v28_v9 = vld [vmem:[%s336_s2] sm:$0xff]  ;;  %s241_s26 = smov [#allocation2]   ;;  %s191_s29 = sshll.u32 %s341_s7, 4  ;;  %s192_s29 = int_to_ptr.hbm [resolvable:$true] %s191_s29 }
   0x6   :  { %v34_v10 = vld [vmem:[%s340_s6] sm:$0x1f]  ;;  %v33_v11 = vld [vmem:[%s338_s4 + $0x8] sm:$0xff]  ;;  %s189_s27 = sshll.u32 %s241_s26, 4  ;;  %s190_s27 = int_to_ptr.vmem [resolvable:$true] %s189_s27 }
   0x7   :  { %118 = vperm.xlu2 %213, %v33_v11   ;;  %v32_v16 = vld [vmem:[%s338_s4] sm:$0xff]  ;;  %v110_v30 = vld [vmem:[%s337_s3 + $0x8] sm:$0xff] }
   0x8   :  { %v109_v29 = vld [vmem:[%s337_s3] sm:$0xff] }
   0x9   :  { %v153_v39 = vld [vmem:[%s339_s5] sm:$0x1f] }
   0xa   :  { %51 = vperm.xlu0 %211, %v30_v7  }
   0xb   :  { %204 = vmatmul.msk.f32.gmra.mxu3 %vm59_vm1, %v38_v6 }
   0xc   :  { %202 = vmatmul.msk.f32.gmra.mxu0 %vm59_vm1, %v36_v8  ;;  %41 = vperm.xlu1 %212, %v28_v9  }
   0xf   :  { %113 = vperm.xlu2 %213, %v32_v16  }
  0x12   :  { %156 = vperm.xlu0 %211, %v34_v10  }
  0x61   :  { %v119_v31 = vpop.permute.xlu2 %118 }
  0x69   :  { %v114_v33 = vpop.permute.xlu2 %113 }
  0x74   :  { %v57_v12 = vpop.permute.xlu0 %56 }
  0x76   :  { %v47_v14 = vpop.permute.xlu1 %46 }
  0x7c   :  { %v52_v17 = vpop.permute.xlu0 %51 }
  0x7e   :  { %v42_v22 = vpop.permute.xlu1 %41 }
  0x81   :  { %v93_v13 = vpop.f32.mrf.mxu0 }
  0x82   :  { %v94_v26 = vadd.f32 %v93_v13, %v42_v22 }
  0x84   :  { %v105_v28 = vmax.f32 %v94_v26, 0.0  ;;  %v157_v40 = vpop.permute.xlu0 %156 }
  0x86   :  { %v99_v15 = vpop.f32.mrf.mxu3 }
  0x87   :  { %v100_v20 = vadd.f32 %v99_v15, %v52_v17 }
  0x89   :  { %v96_v18 = vpop.f32.mrf.mxu0  ;;  %v107_v25 = vmax.f32 %v100_v20, 0.0 }
  0x8a   :  { %v97_v23 = vadd.f32 %v96_v18, %v47_v14 }
  0x8c   :  { %v106_v27 = vmax.f32 %v97_v23, 0.0 }
  0x8e   :  { %v102_v19 = vpop.f32.mrf.mxu3 }
  0x8f   :  { %v103_v21 = vadd.f32 %v102_v19, %v57_v12 }
  0x91   :  { %v108_v24 = vmax.f32 %v103_v21, 0.0 }
  0x93   :  { %140 = vmatpush.msra.mxu1 %v108_v24 }
  0x95   :  { %141 = vmatpush.msra.mxu1 %v107_v25 }
  0x97   :  { %142 = vmatpush.msra.mxu1 %v106_v27 }
  0x99   :  { %143 = vmatpush.msra.mxu1 %v105_v28 }
  0x9a   :  { %205 = vmatmul.msk.f32.vlgmr.msra.gmra.mxu1 %vm121_vm2, %v109_v29 }
  0xa2   :  { %206 = vmatmul.msk.f32.gmra.mxu1 %vm121_vm2, %v110_v30 }
 0x117   :  { %v145_v32 = vpop.f32.mrf.mxu1 }
 0x118   :  { %v146_v35 = vadd.f32 %v145_v32, %v114_v33 }
 0x11a   :  { %v151_v38 = vmax.f32 %v146_v35, 0.0 }
 0x11f   :  { %v148_v34 = vpop.f32.mrf.mxu1 }
 0x120   :  { %v149_v36 = vadd.f32 %v148_v34, %v119_v31 }
 0x122   :  { %v152_v37 = vmax.f32 %v149_v36, 0.0 }
 0x124   :  { %177 = vmatpush.msra.mxu2 %v152_v37 }
 0x126   :  { %178 = vmatpush.msra.mxu2 %v151_v38 }
 0x127   :  { %207 = vmatmul.msk.f32.vlgmr.msra.gmra.mxu2 %vm159_vm3, %v153_v39 }
 0x1aa   :  { %v180_v41 = vpop.f32.mrf.mxu2 }
 0x1ab   :  { %v181_v42 = vadd.f32 %v180_v41, %v157_v40 }
 0x1ad   :  { %183 = vst [vmem:[#allocation2] sm:$0x1f] %v181_v42 }
 0x1ae   :  { %194 = dma.vmem_to_hbm [thread:$0]  %s190_s27, 128, %s192_s29, [#allocation3]  }
 0x1af   :  { %238 = dma.done.wait [#allocation3], 128  }
 0x1b0   :  { %239 = vsyncadd [#allocation3], 4294967168 }
 0x1b1   :  { %199 = vsyncpa [#allocation3], 1 }

</bundles_post_ra>
